<compile_context>
chip_gen: v5e
topology: v5e:2x2
jax: 0.10.0
libtpu: 0.0.40
codegen_flags: <defaults>
</compile_context>

<pallas_src>
import functools

import jax
import jax.numpy as jnp
from jax.experimental import pallas as pl
from jax.experimental.pallas import tpu as pltpu


def _round_up(x, m):
    return ((x + m - 1) // m) * m


def _critic_kernel(x_ref, w1_ref, b1_ref, w2_ref, b2_ref, o_ref, acc_ref, *, inv_s):
    # x_ref: (TB, TS, Hp), w1_ref: (Hp, Hp), b1_ref: (1, Hp),
    # w2_ref: (Hp, 128), b2_ref: (1, 128), o_ref: (TB, 128), acc_ref: (TB, Hp) f32
    s = pl.program_id(1)

    @pl.when(s == 0)
    def _():
        acc_ref[...] = jnp.zeros_like(acc_ref)

    # Accumulate the per-batch-row sequence sum for this tile (XLU sublane-sum).
    x = x_ref[...].astype(jnp.float32)                 # (TB, TS, Hp)
    acc_ref[...] += jnp.sum(x, axis=1)                 # (TB, Hp)

    @pl.when(s == pl.num_programs(1) - 1)
    def _():
        pooled = acc_ref[...] * inv_s                  # single multiply by 1/S
        h = jnp.dot(pooled, w1_ref[...], preferred_element_type=jnp.float32)
        h = jnp.maximum(h + b1_ref[...], 0.0)
        out = jnp.dot(h, w2_ref[...], preferred_element_type=jnp.float32)
        o_ref[...] = (out + b2_ref[...]).astype(o_ref.dtype)


def prepare_params(w1, b1, w2, b2):
    """One-time conversion of PyTorch-layout (out, in) weights into padded,
    transposed kernel-layout operands. Do this at init time, not per call."""
    H = w1.shape[0]
    Hp = _round_up(H, 128)
    w1_t = jnp.zeros((Hp, Hp), jnp.float32).at[:H, :H].set(jnp.asarray(w1, jnp.float32).T)
    b1_p = jnp.zeros((1, Hp), jnp.float32).at[0, :H].set(jnp.asarray(b1, jnp.float32))
    # fc2 output dim padded to 128 lanes so the final store is lane-dense.
    w2_t = jnp.zeros((Hp, 128), jnp.float32).at[:H, 0].set(jnp.asarray(w2, jnp.float32)[0])
    b2_p = jnp.zeros((1, 128), jnp.float32).at[0, 0].set(jnp.asarray(b2, jnp.float32)[0])
    return w1_t, b1_p, w2_t, b2_p


def critic_forward(encoder_outputs, w1_t, b1_p, w2_t, b2_p):
    """encoder_outputs: (B, S, H), any float dtype (kept as-is through the DMA).
    Prepared params from prepare_params(). Returns (B,) float32."""
    B, S, H = encoder_outputs.shape
    Hp = w1_t.shape[0]
    assert Hp == _round_up(H, 128), "params were prepared for a different hidden_dim"

    x = encoder_outputs
    itemsize = jnp.dtype(x.dtype).itemsize

    # Batch tile: sublane-aligned (8 for f32, 16 for 2-byte dtypes), capped.
    sub = 16 if itemsize == 2 else 8
    TB = min(_round_up(B, sub), 128)
    Bp = _round_up(B, TB)

    # Sequence tile: target ~2 MiB of x per block (Pallas double-buffers it).
    budget = 2 * 1024 * 1024
    ts = max(8, budget // max(TB * Hp * itemsize, 1))
    ts = max(8, (ts // 8) * 8)
    S8 = _round_up(S, 8)
    TS = min(ts, S8)
    Sp = _round_up(S, TS)

    pad_b, pad_s, pad_h = Bp - B, Sp - S, Hp - H
    if pad_b or pad_s or pad_h:
        # Zero padding is exact: padded rows/lanes contribute 0 to the sum and
        # hit zero-padded weight rows/columns downstream.
        x = jnp.pad(x, ((0, pad_b), (0, pad_s), (0, pad_h)))

    grid = (Bp // TB, Sp // TS)

    # VMEM budget estimate (double-buffered x and output, resident weights, scratch).
    x_block_bytes = TB * TS * Hp * itemsize
    weight_bytes = 4 * (Hp * Hp + Hp + Hp * 128 + 128)
    vmem_est = 2 * (x_block_bytes + TB * 128 * 4) + weight_bytes + TB * Hp * 4
    vmem_limit = int(min(max(2 * vmem_est, 16 * 1024 * 1024), 64 * 1024 * 1024))

    kernel = functools.partial(_critic_kernel, inv_s=1.0 / S)

    out = pl.pallas_call(
        kernel,
        out_shape=jax.ShapeDtypeStruct((Bp, 128), jnp.float32),
        grid_spec=pltpu.PrefetchScalarGridSpec(
            num_scalar_prefetch=0,
            grid=grid,
            in_specs=[
                pl.BlockSpec((TB, TS, Hp), lambda i, s: (i, s, 0)),   # x: streamed
                pl.BlockSpec((Hp, Hp), lambda i, s: (0, 0)),          # w1: resident
                pl.BlockSpec((1, Hp), lambda i, s: (0, 0)),           # b1: resident
                pl.BlockSpec((Hp, 128), lambda i, s: (0, 0)),         # w2: resident
                pl.BlockSpec((1, 128), lambda i, s: (0, 0)),          # b2: resident
            ],
            out_specs=pl.BlockSpec((TB, 128), lambda i, s: (i, 0)),   # resident over s
            scratch_shapes=[pltpu.VMEM((TB, Hp), jnp.float32)],
        ),
        compiler_params=pltpu.CompilerParams(
            dimension_semantics=("parallel", "arbitrary"),
            vmem_limit_bytes=vmem_limit,
        ),
    )(x, w1_t, b1_p, w2_t, b2_p)

    return out[:B, 0]  # .squeeze(-1) -> (B,)


def _init_params(key, hidden_dim):
    # Deterministic init mimicking nn.Linear default (uniform(-1/sqrt(in), 1/sqrt(in))).
    k1, k2, k3, k4 = jax.random.split(key, 4)
    bound1 = 1.0 / jnp.sqrt(hidden_dim)
    w1 = jax.random.uniform(k1, (hidden_dim, hidden_dim), jnp.float32, -bound1, bound1)
    b1 = jax.random.uniform(k2, (hidden_dim,), jnp.float32, -bound1, bound1)
    w2 = jax.random.uniform(k3, (1, hidden_dim), jnp.float32, -bound1, bound1)
    b2 = jax.random.uniform(k4, (1,), jnp.float32, -bound1, bound1)
    return w1, b1, w2, b2


if __name__ == "__main__":
    B, S, H = 2, 8, 32
    key = jax.random.PRNGKey(0)
    kx, kp = jax.random.split(key)

    encoder_outputs = jax.random.normal(kx, (B, S, H), jnp.float32)
    w1, b1, w2, b2 = _init_params(kp, H)

    params = prepare_params(w1, b1, w2, b2)   # one-time weight transpose/pad
    out = critic_forward(encoder_outputs, *params)
    out = jax.block_until_ready(out)

    # Pure-JAX reference of the same forward pass.
    pooled = encoder_outputs.mean(axis=1)
    ref = jnp.maximum(pooled @ w1.T + b1, 0.0) @ w2.T + b2
    ref = ref[:, 0]

    assert out.shape == (B,)
    assert jnp.allclose(out, ref, atol=1e-4, rtol=1e-4), (out, ref)

    print("KERNEL_OK")
</pallas_src>

<mosaic_0001>
module attributes {stable_mosaic.version = 11 : i64} {
  func.func @_critic_kernel(%arg0: i32, %arg1: i32, %arg2: memref<8x8x128xf32, #tpu.memory_space<vmem>>, %arg3: memref<128x128xf32, #tpu.memory_space<vmem>>, %arg4: memref<1x128xf32, #tpu.memory_space<vmem>>, %arg5: memref<128x128xf32, #tpu.memory_space<vmem>>, %arg6: memref<1x128xf32, #tpu.memory_space<vmem>>, %arg7: memref<8x128xf32, #tpu.memory_space<vmem>>, %arg8: memref<8x128xf32, #tpu.memory_space<vmem>>) attributes {dimension_semantics = [#tpu.dimension_semantics<parallel>, #tpu.dimension_semantics<arbitrary>], iteration_bounds = array<i64: 1, 1>, scalar_prefetch = 0 : i64, scratch_operands = 1 : i64, tpu.core_type = #tpu.core_type<tc>, window_params = [{transform_indices = @transform_0, window_bounds = array<i64: 8, 8, 128>}, {pipeline_mode = #tpu.pipeline_mode<synchronous>, transform_indices = @transform_1, window_bounds = array<i64: 128, 128>}, {pipeline_mode = #tpu.pipeline_mode<synchronous>, transform_indices = @transform_2, window_bounds = array<i64: 1, 128>}, {pipeline_mode = #tpu.pipeline_mode<synchronous>, transform_indices = @transform_3, window_bounds = array<i64: 128, 128>}, {pipeline_mode = #tpu.pipeline_mode<synchronous>, transform_indices = @transform_4, window_bounds = array<i64: 1, 128>}, {transform_indices = @transform_5, window_bounds = array<i64: 8, 128>}]} {
    %c0_i32 = arith.constant 0 : i32
    %0 = arith.cmpi eq, %arg1, %c0_i32 : i32
    %1 = arith.extui %0 : i1 to i32
    %c0_i32_0 = arith.constant 0 : i32
    %2 = arith.cmpi ne, %1, %c0_i32_0 : i32
    scf.if %2 {
      %cst_9 = arith.constant 0.000000e+00 : f32
      %11 = vector.broadcast %cst_9 : f32 to vector<8x128xf32>
      %c0_10 = arith.constant 0 : index
      %c0_11 = arith.constant 0 : index
      %12 = vector.load %arg8[%c0_10, %c0_11] : memref<8x128xf32, #tpu.memory_space<vmem>>, vector<8x128xf32>
      tpu.vector_store %arg8[%c0_10, %c0_11], %11 {strides = array<i32>} : memref<8x128xf32, #tpu.memory_space<vmem>>, vector<8x128xf32>,
    } else {
    }
    %c0 = arith.constant 0 : index
    %c0_1 = arith.constant 0 : index
    %c0_2 = arith.constant 0 : index
    %3 = vector.load %arg2[%c0, %c0_1, %c0_2] : memref<8x8x128xf32, #tpu.memory_space<vmem>>, vector<8x8x128xf32>
    %c0_3 = arith.constant 0 : index
    %c0_4 = arith.constant 0 : index
    %4 = vector.load %arg8[%c0_3, %c0_4] : memref<8x128xf32, #tpu.memory_space<vmem>>, vector<8x128xf32>
    %cst = arith.constant dense<0.000000e+00> : vector<8x128xf32>
    %5 = vector.multi_reduction <add>, %3, %cst [1] : vector<8x8x128xf32> to vector<8x128xf32>
    %6 = arith.addf %4, %5 : vector<8x128xf32>
    %c0_5 = arith.constant 0 : index
    %c0_6 = arith.constant 0 : index
    %7 = vector.load %arg8[%c0_5, %c0_6] : memref<8x128xf32, #tpu.memory_space<vmem>>, vector<8x128xf32>
    tpu.vector_store %arg8[%c0_5, %c0_6], %6 {strides = array<i32>} : memref<8x128xf32, #tpu.memory_space<vmem>>, vector<8x128xf32>,
    %c0_i32_7 = arith.constant 0 : i32
    %8 = arith.cmpi eq, %arg1, %c0_i32_7 : i32
    %9 = arith.extui %8 : i1 to i32
    %c0_i32_8 = arith.constant 0 : i32
    %10 = arith.cmpi ne, %9, %c0_i32_8 : i32
    scf.if %10 {
      %c0_9 = arith.constant 0 : index
      %c0_10 = arith.constant 0 : index
      %11 = vector.load %arg8[%c0_9, %c0_10] : memref<8x128xf32, #tpu.memory_space<vmem>>, vector<8x128xf32>
      %cst_11 = arith.constant 1.250000e-01 : f32
      %12 = vector.broadcast %cst_11 : f32 to vector<8x128xf32>
      %13 = arith.mulf %11, %12 : vector<8x128xf32>
      %c0_12 = arith.constant 0 : index
      %c0_13 = arith.constant 0 : index
      %14 = vector.load %arg3[%c0_12, %c0_13] : memref<128x128xf32, #tpu.memory_space<vmem>>, vector<128x128xf32>
      %cst_14 = arith.constant dense<0.000000e+00> : vector<8x128xf32>
      %15 = tpu.matmul %13, %14, %cst_14 {dimension_numbers = #tpu.dot_dimension_numbers<[1], [0], [0], [1], [0, 0, 1, 1], [], []>} : vector<8x128xf32>, vector<128x128xf32>, vector<8x128xf32> -> vector<8x128xf32>
      %c0_15 = arith.constant 0 : index
      %c0_16 = arith.constant 0 : index
      %16 = vector.load %arg4[%c0_15, %c0_16] : memref<1x128xf32, #tpu.memory_space<vmem>>, vector<1x128xf32>
      %17 = vector.broadcast %16 : vector<1x128xf32> to vector<8x128xf32>
      %18 = arith.addf %15, %17 : vector<8x128xf32>
      %cst_17 = arith.constant 0.000000e+00 : f32
      %19 = vector.broadcast %cst_17 : f32 to vector<8x128xf32>
      %20 = arith.maximumf %18, %19 : vector<8x128xf32>
      %c0_18 = arith.constant 0 : index
      %c0_19 = arith.constant 0 : index
      %21 = vector.load %arg5[%c0_18, %c0_19] : memref<128x128xf32, #tpu.memory_space<vmem>>, vector<128x128xf32>
      %cst_20 = arith.constant dense<0.000000e+00> : vector<8x128xf32>
      %22 = tpu.matmul %20, %21, %cst_20 {dimension_numbers = #tpu.dot_dimension_numbers<[1], [0], [0], [1], [0, 0, 1, 1], [], []>} : vector<8x128xf32>, vector<128x128xf32>, vector<8x128xf32> -> vector<8x128xf32>
      %c0_21 = arith.constant 0 : index
      %c0_22 = arith.constant 0 : index
      %23 = vector.load %arg6[%c0_21, %c0_22] : memref<1x128xf32, #tpu.memory_space<vmem>>, vector<1x128xf32>
      %24 = vector.broadcast %23 : vector<1x128xf32> to vector<8x128xf32>
      %25 = arith.addf %22, %24 : vector<8x128xf32>
      %c0_23 = arith.constant 0 : index
      %c0_24 = arith.constant 0 : index
      %26 = vector.load %arg7[%c0_23, %c0_24] : memref<8x128xf32, #tpu.memory_space<vmem>>, vector<8x128xf32>
      tpu.vector_store %arg7[%c0_23, %c0_24], %25 {strides = array<i32>} : memref<8x128xf32, #tpu.memory_space<vmem>>, vector<8x128xf32>,
    } else {
    }
    return
  }
  func.func @transform_0(%arg0: i32, %arg1: i32) -> (i32, i32, i32) {
    %c0_i32 = arith.constant 0 : i32
    %c0_i32_0 = arith.constant 0 : i32
    return %arg0, %arg1, %c0_i32 : i32, i32, i32
  }
  func.func @transform_1(%arg0: i32, %arg1: i32) -> (i32, i32) {
    %c0_i32 = arith.constant 0 : i32
    %c0_i32_0 = arith.constant 0 : i32
    %c0_i32_1 = arith.constant 0 : i32
    return %c0_i32, %c0_i32_0 : i32, i32
  }
  func.func @transform_2(%arg0: i32, %arg1: i32) -> (i32, i32) {
    %c0_i32 = arith.constant 0 : i32
    %c0_i32_0 = arith.constant 0 : i32
    %c0_i32_1 = arith.constant 0 : i32
    return %c0_i32, %c0_i32_0 : i32, i32
  }
  func.func @transform_3(%arg0: i32, %arg1: i32) -> (i32, i32) {
    %c0_i32 = arith.constant 0 : i32
    %c0_i32_0 = arith.constant 0 : i32
    %c0_i32_1 = arith.constant 0 : i32
    return %c0_i32, %c0_i32_0 : i32, i32
  }
  func.func @transform_4(%arg0: i32, %arg1: i32) -> (i32, i32) {
    %c0_i32 = arith.constant 0 : i32
    %c0_i32_0 = arith.constant 0 : i32
    %c0_i32_1 = arith.constant 0 : i32
    return %c0_i32, %c0_i32_0 : i32, i32
  }
  func.func @transform_5(%arg0: i32, %arg1: i32) -> (i32, i32) {
    %c0_i32 = arith.constant 0 : i32
    %c0_i32_0 = arith.constant 0 : i32
    return %arg0, %c0_i32 : i32, i32
  }
}

</mosaic_0001>

<bundles_post_ra>
// kernel: tpu_custom_call.1
= control target key start
LH: loop header
LB: loop body
LE: loop exit
PB: predicated region body
PF: predicated region fallthrough
CT: control target
= control target key end

     0   :  { %10 = vsyncpa [#allocation4], 0  ;;  %s427_s0 = inlined_call_operand.hbm [shape: f32[8,8,128], index: 0, kind: input, shape index: {}]   ;;  %s428_s1 = inlined_call_operand.hbm [shape: f32[128,128], index: 1, kind: input, shape index: {}]   ;;  %s429_s2 = inlined_call_operand.vmem [shape: f32[1,128], index: 2, kind: input, shape index: {}]   ;;  %s430_s3 = inlined_call_operand.hbm [shape: f32[128,128], index: 3, kind: input, shape index: {}]   ;;  %s431_s4 = inlined_call_operand.vmem [shape: f32[1,128], index: 4, kind: input, shape index: {}]   ;;  %s432_s5 = inlined_call_operand.hbm [shape: f32[8,128], index: 5, kind: output, shape index: {}]  }
   0x1   :  { %11 = vsyncpa [#allocation7], 0 }
   0x2   :  { %12 = vsyncpa [#allocation5], 0  ;;  %s30_s20 = sshll.u32 %s428_s1, 4  ;;  %s370_s21 = smov [#allocation6]   ;;  %s31_s20 = int_to_ptr.hbm [resolvable:$true] %s30_s20 }
   0x3   :  { %s32_s22 = sshll.u32 %s370_s21, 4  ;;  %s17_s25 = sshll.u32 %s427_s0, 4  ;;  %s33_s22 = int_to_ptr.vmem [resolvable:$true] %s32_s22  ;;  %s18_s25 = int_to_ptr.hbm [resolvable:$true] %s17_s25 }
   0x4   :  { %s371_s26 = smov 128   ;;  %s372_s27 = smov 8  }
   0x5   :  { %38 = dma.hbm_to_vmem [thread:$0]  %s31_s20, 2048, %s33_s22, [#allocation7], %s371_s26, %s371_s26, %s372_s27  }
   0x6   :  { %s373_s28 = smov [#allocation3]   ;;  %s45_s7 = sshll.u32 %s430_s3, 4  ;;  %s46_s7 = int_to_ptr.hbm [resolvable:$true] %s45_s7 }
   0x7   :  { %s19_s29 = sshll.u32 %s373_s28, 4  ;;  %s374_s1 = smov [#allocation8]   ;;  %s20_s29 = int_to_ptr.vmem [resolvable:$true] %s19_s29 }
   0x8   :  { %25 = dma.hbm_to_vmem [thread:$0]  %s18_s25, 1024, %s20_s29, [#allocation4], %s371_s26, %s371_s26, %s372_s27  }
   0x9   :  { %s47_s8 = sshll.u32 %s374_s1, 4  ;;  %s48_s8 = int_to_ptr.vmem [resolvable:$true] %s47_s8 }
   0xa   :  { %53 = dma.hbm_to_vmem [thread:$0]  %s46_s7, 2048, %s48_s8, [#allocation7], %s371_s26, %s371_s26, %s372_s27  }
   0xb   :  { %364 = dma.done.wait [#allocation4], 1024  }
   0xc   :  { %365 = vsyncadd [#allocation4], 4294966272 }
   0xd   :  { %366 = dma.done.wait [#allocation7], 4096  }
   0xe   :  { %367 = vsyncadd [#allocation7], 4294963200  ;;  %v175_v0 = vld [vmem:[#allocation6 + $0x78] sm:$0xff]  ;;  %v174_v1 = vld [vmem:[#allocation6 + $0x70] sm:$0xff]  ;;  %vm138_vm0 = vcmask 1041409   ;;  %vm140_vm1 = vcmask 1042434  }
   0xf   :  { %180 = vmatpush.msra.mxu0 %v175_v0  ;;  %v173_v2 = vld [vmem:[#allocation6 + $0x68] sm:$0xff]  ;;  %v172_v3 = vld [vmem:[#allocation6 + $0x60] sm:$0xff]  ;;  %v171_v4 = vld [vmem:[#allocation6 + $0x58] sm:$0xff]  ;;  %vm142_vm2 = vcmask 1043459   ;;  %vm144_vm3 = vcmask 1044484   ;;  %vm146_vm4 = vcmask 1045509  }
  0x10   :  { %v73_v5 = vld [vmem:[#allocation3] sm:$0xff]  ;;  %v74_v6 = vld [vmem:[#allocation3 + $0x8] sm:$0xff]  ;;  %v75_v7 = vld [vmem:[#allocation3 + $0x10] sm:$0xff]  ;;  %vm148_vm5 = vcmask 1046534   ;;  %vm150_vm6 = vcmask 1047559   ;;  %s375_s11 = smov [#allocation9]  }
  0x11   :  { %181 = vmatpush.msra.mxu0 %v174_v1  ;;  %v76_v8 = vld [vmem:[#allocation3 + $0x18] sm:$0xff]  ;;  %v77_v9 = vld [vmem:[#allocation3 + $0x20] sm:$0xff]  ;;  %v82_v10 = vrot.slane %v73_v5, 4  ;;  %v88_v11 = vrot.slane %v74_v6, 4  ;;  %v78_v12 = vld [vmem:[#allocation3 + $0x28] sm:$0xff]  ;;  %v94_v15 = vrot.slane %v75_v7, 4 }
  0x12   :  { %v79_v13 = vld [vmem:[#allocation3 + $0x30] sm:$0xff]  ;;  %v80_v14 = vld [vmem:[#allocation3 + $0x38] sm:$0xff]  ;;  %v100_v16 = vrot.slane %v76_v8, 4  ;;  %v106_v17 = vrot.slane %v77_v9, 4  ;;  %v112_v21 = vrot.slane %v78_v12, 4  ;;  %v169_v29 = vld [vmem:[#allocation6 + $0x48] sm:$0xff] }
  0x13   :  { %182 = vmatpush.msra.mxu0 %v173_v2  ;;  %v170_v18 = vld [vmem:[#allocation6 + $0x50] sm:$0xff]  ;;  %v83_v19 = vadd.f32 %v82_v10, %v73_v5  ;;  %v89_v20 = vadd.f32 %v88_v11, %v74_v6  ;;  %v118_v22 = vrot.slane %v79_v13, 4  ;;  %v216_v23 = vld [vmem:[#allocation8 + $0x78] sm:$0xff]  ;;  %v95_v25 = vadd.f32 %v94_v15, %v75_v7  ;;  %v214_v34 = vld [vmem:[#allocation8 + $0x68] sm:$0xff]  ;;  %s247_s12 = sshll.u32 %s375_s11, 4  ;;  %s249_s15 = sshll.u32 %s432_s5, 4  ;;  %s248_s12 = int_to_ptr.vmem [resolvable:$true] %s247_s12  ;;  %s250_s15 = int_to_ptr.hbm [resolvable:$true] %s249_s15 }
  0x14   :  { %v215_v24 = vld [vmem:[#allocation8 + $0x70] sm:$0xff]  ;;  %v101_v26 = vadd.f32 %v100_v16, %v76_v8  ;;  %v107_v27 = vadd.f32 %v106_v17, %v77_v9  ;;  %v124_v28 = vrot.slane %v80_v14, 4  ;;  %221 = vmatpush.msra.mxu1 %v216_v23  ;;  %v113_v32 = vadd.f32 %v112_v21, %v78_v12  ;;  %v168_v39 = vld [vmem:[#allocation6 + $0x40] sm:$0xff]  ;;  %v167_v49 = vld [vmem:[#allocation6 + $0x38] sm:$0xff] }
  0x15   :  { %183 = vmatpush.msra.mxu0 %v172_v3  ;;  %v84_v30 = vrot.slane %v83_v19, 2  ;;  %v90_v31 = vrot.slane %v89_v20, 2  ;;  %v119_v33 = vadd.f32 %v118_v22, %v79_v13  ;;  %v96_v35 = vrot.slane %v95_v25, 2  ;;  %v213_v44 = vld [vmem:[#allocation8 + $0x60] sm:$0xff]  ;;  %v212_v54 = vld [vmem:[#allocation8 + $0x58] sm:$0xff]  ;;  %v166_v59 = vld [vmem:[#allocation6 + $0x30] sm:$0xff] }
  0x16   :  { %v102_v36 = vrot.slane %v101_v26, 2  ;;  %v108_v37 = vrot.slane %v107_v27, 2  ;;  %v125_v38 = vadd.f32 %v124_v28, %v80_v14  ;;  %222 = vmatpush.msra.mxu1 %v215_v24  ;;  %v114_v42 = vrot.slane %v113_v32, 2  ;;  %v211_v0 = vld [vmem:[#allocation8 + $0x50] sm:$0xff]  ;;  %v165_v5 = vld [vmem:[#allocation6 + $0x28] sm:$0xff]  ;;  %v164_v11 = vld [vmem:[#allocation6 + $0x20] sm:$0xff] }
  0x17   :  { %184 = vmatpush.msra.mxu0 %v171_v4  ;;  %v85_v40 = vadd.f32 %v84_v30, %v83_v19  ;;  %v91_v41 = vadd.f32 %v90_v31, %v89_v20  ;;  %v120_v43 = vrot.slane %v119_v33, 2  ;;  %v97_v45 = vadd.f32 %v96_v35, %v95_v25  ;;  %v210_v8 = vld [vmem:[#allocation8 + $0x48] sm:$0xff]  ;;  %v209_v13 = vld [vmem:[#allocation8 + $0x40] sm:$0xff]  ;;  %v163_v16 = vld [vmem:[#allocation6 + $0x18] sm:$0xff] }
  0x18   :  { %v103_v46 = vadd.f32 %v102_v36, %v101_v26  ;;  %v109_v47 = vadd.f32 %v108_v37, %v107_v27  ;;  %v126_v48 = vrot.slane %v125_v38, 2  ;;  %223 = vmatpush.msra.mxu1 %v214_v34  ;;  %v115_v52 = vadd.f32 %v114_v42, %v113_v32  ;;  %v162_v20 = vld [vmem:[#allocation6 + $0x10] sm:$0xff]  ;;  %v161_v23 = vld [vmem:[#allocation6 + $0x8] sm:$0xff]  ;;  %v160_v25 = vld [vmem:[#allocation6] sm:$0xff] }
  0x19   :  { %185 = vmatpush.msra.mxu0 %v170_v18  ;;  %v86_v50 = vrot.slane %v85_v40, 1  ;;  %v92_v51 = vrot.slane %v91_v41, 1  ;;  %v121_v53 = vadd.f32 %v120_v43, %v119_v33  ;;  %v98_v55 = vrot.slane %v97_v45, 1  ;;  %v208_v18 = vld [vmem:[#allocation8 + $0x38] sm:$0xff]  ;;  %v207_v21 = vld [vmem:[#allocation8 + $0x30] sm:$0xff]  ;;  %v206_v24 = vld [vmem:[#allocation8 + $0x28] sm:$0xff] }
  0x1a   :  { %v104_v56 = vrot.slane %v103_v46, 1  ;;  %v110_v57 = vrot.slane %v109_v47, 1  ;;  %v127_v58 = vadd.f32 %v126_v48, %v125_v38  ;;  %224 = vmatpush.msra.mxu1 %v213_v44  ;;  %v116_v62 = vrot.slane %v115_v52, 1  ;;  %v205_v27 = vld [vmem:[#allocation8 + $0x20] sm:$0xff]  ;;  %v204_v28 = vld [vmem:[#allocation8 + $0x18] sm:$0xff]  ;;  %v202_v30 = vld [vmem:[#allocation8 + $0x8] sm:$0xff] }
  0x1b   :  { %186 = vmatpush.msra.mxu0 %v169_v29  ;;  %v87_v60 = vadd.f32 %v86_v50, %v85_v40  ;;  %v93_v61 = vadd.f32 %v92_v51, %v91_v41  ;;  %v122_v63 = vrot.slane %v121_v53, 1  ;;  %v99_v1 = vadd.f32 %v98_v55, %v97_v45  ;;  %v203_v29 = vld [vmem:[#allocation8 + $0x10] sm:$0xff]  ;;  %v201_v31 = vld [vmem:[#allocation8] sm:$0xff] }
  0x1c   :  { %v105_v2 = vadd.f32 %v104_v56, %v103_v46  ;;  %v111_v3 = vadd.f32 %v110_v57, %v109_v47  ;;  %v128_v4 = vrot.slane %v127_v58, 1  ;;  %225 = vmatpush.msra.mxu1 %v212_v54  ;;  %v117_v6 = vadd.f32 %v116_v62, %v115_v52  ;;  %v266_v32 = vld [vmem:[%s429_s2] ss:$0 sm:$0xff] }
  0x1d   :  { %187 = vmatpush.msra.mxu0 %v168_v39  ;;  %v139_v7 = vsel %vm138_vm0, %v93_v61, %v87_v60  ;;  %v123_v9 = vadd.f32 %v122_v63, %v121_v53  ;;  %v267_v36 = vld [vmem:[%s431_s4] ss:$0 sm:$0xff] }
  0x1e   :  { %v141_v10 = vsel %vm140_vm1, %v99_v1, %v139_v7  ;;  %226 = vmatpush.msra.mxu1 %v211_v0  ;;  %v129_v14 = vadd.f32 %v128_v4, %v127_v58 }
  0x1f   :  { %188 = vmatpush.msra.mxu0 %v167_v49  ;;  %v143_v12 = vsel %vm142_vm2, %v105_v2, %v141_v10 }
  0x20   :  { %v145_v15 = vsel %vm144_vm3, %v111_v3, %v143_v12  ;;  %227 = vmatpush.msra.mxu1 %v210_v8 }
  0x21   :  { %189 = vmatpush.msra.mxu0 %v166_v59  ;;  %v147_v17 = vsel %vm146_vm4, %v117_v6, %v145_v15 }
  0x22   :  { %v149_v19 = vsel %vm148_vm5, %v123_v9, %v147_v17  ;;  %228 = vmatpush.msra.mxu1 %v209_v13 }
  0x23   :  { %190 = vmatpush.msra.mxu0 %v165_v5  ;;  %v151_v22 = vsel %vm150_vm6, %v129_v14, %v149_v19 }
  0x24   :  { %229 = vmatpush.msra.mxu1 %v208_v18  ;;  %v159_v26 = vmul.f32 0.125, %v151_v22 }
  0x25   :  { %191 = vmatpush.msra.mxu0 %v164_v11 }
  0x26   :  { %230 = vmatpush.msra.mxu1 %v207_v21 }
  0x27   :  { %192 = vmatpush.msra.mxu0 %v163_v16 }
  0x28   :  { %231 = vmatpush.msra.mxu1 %v206_v24 }
  0x29   :  { %193 = vmatpush.msra.mxu0 %v162_v20 }
  0x2a   :  { %232 = vmatpush.msra.mxu1 %v205_v27 }
  0x2b   :  { %194 = vmatpush.msra.mxu0 %v161_v23 }
  0x2c   :  { %233 = vmatpush.msra.mxu1 %v204_v28 }
  0x2d   :  { %195 = vmatpush.msra.mxu0 %v160_v25 }
  0x2e   :  { %196 = vmatmul.f32.vlgmr.msra.gmra.mxu0 %v159_v26  ;;  %234 = vmatpush.msra.mxu1 %v203_v29 }
  0x30   :  { %235 = vmatpush.msra.mxu1 %v202_v30 }
  0x32   :  { %236 = vmatpush.msra.mxu1 %v201_v31 }
  0xab   :  { %v197_v33 = vpop.f32.mrf.mxu0 }
  0xac   :  { %v198_v34 = vadd.f32 %v266_v32, %v197_v33 }
  0xae   :  { %v200_v35 = vmax.f32 %v198_v34, 0.0 }
  0xb0   :  { %237 = vmatmul.f32.vlgmr.msra.gmra.mxu1 %v200_v35 }
 0x12d   :  { %v238_v37 = vpop.f32.mrf.mxu1 }
 0x12e   :  { %v239_v38 = vadd.f32 %v267_v36, %v238_v37 }
 0x130   :  { %241 = vst [vmem:[#allocation9] sm:$0xff] %v239_v38 }
 0x131   :  { %252 = dma.vmem_to_hbm [thread:$0]  %s248_s12, 128, %s250_s15, [#allocation5]  }
 0x132   :  { %368 = dma.done.wait [#allocation5], 128  }
 0x133   :  { %369 = vsyncadd [#allocation5], 4294967168 }
 0x134   :  { %257 = vsyncpa [#allocation4], 1 }
 0x135   :  { %258 = vsyncpa [#allocation7], 1 }
 0x136   :  { %259 = vsyncpa [#allocation5], 1 }

</bundles_post_ra>
